<compile_context>
chip_gen: v5e
topology: v5e:2x2
jax: 0.10.0
libtpu: 0.0.40
codegen_flags: <defaults>
</compile_context>

<pallas_src>
import functools

import jax
import jax.numpy as jnp
import numpy as np
from jax.experimental import pallas as pl
from jax.experimental.pallas import tpu as pltpu

LN_EPS = 1e-5  # PyTorch nn.LayerNorm default


def _round_up(x, m):
    return ((x + m - 1) // m) * m


def _layer_norm(x, gamma, beta):
    mean = jnp.mean(x, axis=-1, keepdims=True)
    var = jnp.mean((x - mean) ** 2, axis=-1, keepdims=True)
    return (x - mean) * jax.lax.rsqrt(var + LN_EPS) * gamma + beta


# ----------------------------------------------------------------------------------
# Parameter slab layout (all row offsets are multiples of 8 -> sublane-aligned slices)
# ----------------------------------------------------------------------------------
def _param_layout(F, Z, L):
    Fp = _round_up(F, 8)          # row stride for FxF matrices
    C = max(F, 2 * Z)             # slab lane width
    off = {}
    r = 0
    off["ln1_g"] = r; r += 8
    off["ln1_b"] = r; r += 8
    off["layers"] = []
    for _ in range(L):
        lo = {}
        lo["w1"] = r; r += Fp
        lo["b1"] = r; r += 8
        lo["w2"] = r; r += Fp
        lo["b2"] = r; r += 8
        lo["ln_g"] = r; r += 8
        lo["ln_b"] = r; r += 8
        off["layers"].append(lo)
    off["head_w"] = r; r += Fp    # [mu_w | var_w]  -> [F, 2Z]
    off["head_b"] = r; r += 8     # [mu_b | var_b]  -> [1, 2Z]
    return off, r, C


def pack_params(params, *, F, Z, L):
    """Pack all module parameters into one [R, C] f32 slab (single kernel input)."""
    off, R, C = _param_layout(F, Z, L)
    slab = np.zeros((R, C), np.float32)

    def put(o, a):
        a = np.asarray(a, np.float32)
        if a.ndim == 1:
            a = a[None, :]
        slab[o:o + a.shape[0], :a.shape[1]] = a

    put(off["ln1_g"], params["ln1_g"])
    put(off["ln1_b"], params["ln1_b"])
    for l in range(L):
        lo = off["layers"][l]
        put(lo["w1"], params["w1"][l])
        put(lo["b1"], params["b1"][l])
        put(lo["w2"], params["w2"][l])
        put(lo["b2"], params["b2"][l])
        put(lo["ln_g"], params["ln_g"][l])
        put(lo["ln_b"], params["ln_b"][l])
    put(off["head_w"], np.concatenate(
        [np.asarray(params["mu_w"]), np.asarray(params["var_w"])], axis=1))
    put(off["head_b"], np.concatenate(
        [np.asarray(params["mu_b"]), np.asarray(params["var_b"])], axis=1))
    return jnp.asarray(slab)


# ----------------------------------------------------------------------------------
# Kernel
# ----------------------------------------------------------------------------------
def latent_encoder_kernel(his_ref, fut_ref, eps_ref, p_ref, out_ref, *,
                          content_size, F, Z, L, layout):
    # interaction_method == 'add'; content slice done in-kernel (lane slice of a vreg)
    diff = fut_ref[...] - his_ref[...]
    feat = diff[:, content_size:]                              # [B, E], E == F

    g1 = p_ref[layout["ln1_g"]:layout["ln1_g"] + 1, :][:, :F]
    b1_ = p_ref[layout["ln1_b"]:layout["ln1_b"] + 1, :][:, :F]
    x = _layer_norm(feat, g1, b1_)

    for l in range(L):                                         # static unroll (L small)
        lo = layout["layers"][l]
        w1 = p_ref[lo["w1"]:lo["w1"] + F, :][:, :F]
        b1 = p_ref[lo["b1"]:lo["b1"] + 1, :][:, :F]
        w2 = p_ref[lo["w2"]:lo["w2"] + F, :][:, :F]
        b2 = p_ref[lo["b2"]:lo["b2"] + 1, :][:, :F]
        h = jnp.dot(x, w1, preferred_element_type=jnp.float32) + b1
        h = jnp.maximum(h, 0.0)                                # afn='relu'
        h = jnp.dot(h, w2, preferred_element_type=jnp.float32) + b2
        lng = p_ref[lo["ln_g"]:lo["ln_g"] + 1, :][:, :F]
        lnb = p_ref[lo["ln_b"]:lo["ln_b"] + 1, :][:, :F]
        x = _layer_norm(x + h, lng, lnb)                       # residual + LayerNorm

    # Fused mu/var head: one [F, 2Z] matmul instead of two [F, Z] matmuls.
    hw = p_ref[layout["head_w"]:layout["head_w"] + F, :][:, :2 * Z]
    hb = p_ref[layout["head_b"]:layout["head_b"] + 1, :][:, :2 * Z]
    mv = jnp.dot(x, hw, preferred_element_type=jnp.float32) + hb   # [B, 2Z] = [mu | var]

    std = jnp.exp(0.5 * mv[:, Z:])
    z = eps_ref[...] * std + mv[:, :Z]

    # Single packed output slab: [mu | var | z]  -> one writeback DMA.
    out_ref[...] = jnp.concatenate([mv, z], axis=-1)


def latent_encoder_forward(his_feat, fut_feat, param_slab, eps, *,
                           content_size, F, Z, L):
    B, E_full = his_feat.shape
    assert E_full - content_size == F, "identity-shortcut ResBlock requires E == F"
    layout, R, C = _param_layout(F, Z, L)
    assert param_slab.shape == (R, C)

    kernel = functools.partial(
        latent_encoder_kernel,
        content_size=content_size, F=F, Z=Z, L=L, layout=layout)

    vmem = lambda: pl.BlockSpec(memory_space=pltpu.MemorySpace.VMEM)
    packed = pl.pallas_call(
        kernel,
        out_shape=jax.ShapeDtypeStruct((B, 3 * Z), jnp.float32),
        in_specs=[vmem(), vmem(), vmem(), vmem()],
        out_specs=vmem(),
    )(his_feat, fut_feat, eps, param_slab)

    mu = packed[:, :Z]
    var = packed[:, Z:2 * Z]
    z = packed[:, 2 * Z:]
    return mu, var, z


# ----------------------------------------------------------------------------------
# Pure-JAX reference (unpacked params), matching the PyTorch semantics
# ----------------------------------------------------------------------------------
def reference_forward(his_feat, fut_feat, params, eps, *, content_size):
    his = his_feat[:, content_size:]
    fut = fut_feat[:, content_size:]
    x = _layer_norm(fut - his, params["ln1_g"], params["ln1_b"])
    L = params["w1"].shape[0]
    for l in range(L):
        h = jnp.maximum(x @ params["w1"][l] + params["b1"][l], 0.0)
        h = h @ params["w2"][l] + params["b2"][l]
        x = _layer_norm(x + h, params["ln_g"][l], params["ln_b"][l])
    mu = x @ params["mu_w"] + params["mu_b"]
    var = x @ params["var_w"] + params["var_b"]
    z = eps * jnp.exp(0.5 * var) + mu
    return mu, var, z


def init_params(key, *, embed_size, content_size, fc_size, noise_size, num_layers):
    E = embed_size - content_size
    F = fc_size
    Z = noise_size
    keys = jax.random.split(key, 8)
    s = lambda fan_in: 1.0 / np.sqrt(fan_in)
    return {
        "ln1_g": jnp.ones((1, E), jnp.float32),
        "ln1_b": jnp.zeros((1, E), jnp.float32),
        # weights stored [in, out] (mathematically equivalent to PyTorch's [out,in].T)
        "w1": jax.random.normal(keys[0], (num_layers, E, F), jnp.float32) * s(E),
        "b1": jax.random.normal(keys[1], (num_layers, 1, F), jnp.float32) * 0.01,
        "w2": jax.random.normal(keys[2], (num_layers, F, F), jnp.float32) * s(F),
        "b2": jax.random.normal(keys[3], (num_layers, 1, F), jnp.float32) * 0.01,
        "ln_g": jnp.ones((num_layers, 1, F), jnp.float32),
        "ln_b": jnp.zeros((num_layers, 1, F), jnp.float32),
        "mu_w": jax.random.normal(keys[4], (F, Z), jnp.float32) * s(F),
        "mu_b": jax.random.normal(keys[5], (1, Z), jnp.float32) * 0.01,
        "var_w": jax.random.normal(keys[6], (F, Z), jnp.float32) * s(F),
        "var_b": jax.random.normal(keys[7], (1, Z), jnp.float32) * 0.01,
    }


if __name__ == "__main__":
    # Module hyperparameters (small, consistent with the forward pass).
    embed_size = 48
    content_size = 16          # -> internal embed = 32
    fc_size = 32               # == internal embed so all ResBlocks use identity shortcut
    noise_size = 16
    num_latent_fc_layers = 2
    B = 8

    key = jax.random.PRNGKey(0)
    k_p, k_h, k_f, k_e = jax.random.split(key, 4)

    params = init_params(
        k_p,
        embed_size=embed_size,
        content_size=content_size,
        fc_size=fc_size,
        noise_size=noise_size,
        num_layers=num_latent_fc_layers,
    )
    param_slab = pack_params(params, F=fc_size, Z=noise_size, L=num_latent_fc_layers)

    his_feat = jax.random.normal(k_h, (B, embed_size), jnp.float32)
    fut_feat = jax.random.normal(k_f, (B, embed_size), jnp.float32)
    # eps plays the role of torch.randn_like(std); sampled host-side (RNG is glue).
    eps = jax.random.normal(k_e, (B, noise_size), jnp.float32)

    mu, var, z = latent_encoder_forward(
        his_feat, fut_feat, param_slab, eps,
        content_size=content_size, F=fc_size, Z=noise_size, L=num_latent_fc_layers,
    )
    jax.block_until_ready((mu, var, z))

    mu_r, var_r, z_r = reference_forward(
        his_feat, fut_feat, params, eps, content_size=content_size
    )
    np.testing.assert_allclose(np.asarray(mu), np.asarray(mu_r), rtol=1e-5, atol=1e-5)
    np.testing.assert_allclose(np.asarray(var), np.asarray(var_r), rtol=1e-5, atol=1e-5)
    np.testing.assert_allclose(np.asarray(z), np.asarray(z_r), rtol=1e-5, atol=1e-5)

    print("KERNEL_OK")
</pallas_src>

<mosaic_0001>
module attributes {stable_mosaic.version = 11 : i64} {
  func.func @latent_encoder_kernel(%arg0: memref<8x48xf32, #tpu.memory_space<vmem>>, %arg1: memref<8x48xf32, #tpu.memory_space<vmem>>, %arg2: memref<8x16xf32, #tpu.memory_space<vmem>>, %arg3: memref<248x32xf32, #tpu.memory_space<vmem>>, %arg4: memref<8x48xf32, #tpu.memory_space<vmem>>) attributes {dimension_semantics = [], scalar_prefetch = 0 : i64, scratch_operands = 0 : i64, tpu.core_type = #tpu.core_type<tc>} {
    %c0 = arith.constant 0 : index
    %c0_0 = arith.constant 0 : index
    %0 = vector.load %arg1[%c0, %c0_0] : memref<8x48xf32, #tpu.memory_space<vmem>>, vector<8x48xf32>
    %c0_1 = arith.constant 0 : index
    %c0_2 = arith.constant 0 : index
    %1 = vector.load %arg0[%c0_1, %c0_2] : memref<8x48xf32, #tpu.memory_space<vmem>>, vector<8x48xf32>
    %2 = arith.subf %0, %1 : vector<8x48xf32>
    %3 = vector.extract_strided_slice %2 {offsets = [0, 16], sizes = [8, 32], strides = [1, 1]} : vector<8x48xf32> to vector<8x32xf32>
    %c0_3 = arith.constant 0 : index
    %c0_4 = arith.constant 0 : index
    %4 = vector.load %arg3[%c0_3, %c0_4] : memref<248x32xf32, #tpu.memory_space<vmem>>, vector<1x32xf32>
    %c8 = arith.constant 8 : index
    %c0_5 = arith.constant 0 : index
    %5 = vector.load %arg3[%c8, %c0_5] : memref<248x32xf32, #tpu.memory_space<vmem>>, vector<1x32xf32>
    %cst = arith.constant dense<0.000000e+00> : vector<8xf32>
    %6 = vector.multi_reduction <add>, %3, %cst [1] : vector<8x32xf32> to vector<8xf32>
    %7 = vector.shape_cast %6 : vector<8xf32> to vector<8x1xf32>
    %cst_6 = arith.constant 3.200000e+01 : f32
    %8 = vector.broadcast %cst_6 : f32 to vector<8x1xf32>
    %9 = arith.divf %7, %8 : vector<8x1xf32>
    %10 = vector.broadcast %9 : vector<8x1xf32> to vector<8x32xf32>
    %11 = arith.subf %3, %10 : vector<8x32xf32>
    %12 = arith.mulf %11, %11 : vector<8x32xf32>
    %cst_7 = arith.constant dense<0.000000e+00> : vector<8xf32>
    %13 = vector.multi_reduction <add>, %12, %cst_7 [1] : vector<8x32xf32> to vector<8xf32>
    %14 = vector.shape_cast %13 : vector<8xf32> to vector<8x1xf32>
    %cst_8 = arith.constant 3.200000e+01 : f32
    %15 = vector.broadcast %cst_8 : f32 to vector<8x1xf32>
    %16 = arith.divf %14, %15 : vector<8x1xf32>
    %17 = vector.broadcast %9 : vector<8x1xf32> to vector<8x32xf32>
    %18 = arith.subf %3, %17 : vector<8x32xf32>
    %cst_9 = arith.constant 9.99999974E-6 : f32
    %19 = vector.broadcast %cst_9 : f32 to vector<8x1xf32>
    %20 = arith.addf %16, %19 : vector<8x1xf32>
    %21 = math.rsqrt %20 : vector<8x1xf32>
    %22 = vector.broadcast %21 : vector<8x1xf32> to vector<8x32xf32>
    %23 = arith.mulf %18, %22 : vector<8x32xf32>
    %24 = vector.broadcast %4 : vector<1x32xf32> to vector<8x32xf32>
    %25 = arith.mulf %23, %24 : vector<8x32xf32>
    %26 = vector.broadcast %5 : vector<1x32xf32> to vector<8x32xf32>
    %27 = arith.addf %25, %26 : vector<8x32xf32>
    %c16 = arith.constant 16 : index
    %c0_10 = arith.constant 0 : index
    %28 = vector.load %arg3[%c16, %c0_10] : memref<248x32xf32, #tpu.memory_space<vmem>>, vector<32x32xf32>
    %c48 = arith.constant 48 : index
    %c0_11 = arith.constant 0 : index
    %29 = vector.load %arg3[%c48, %c0_11] : memref<248x32xf32, #tpu.memory_space<vmem>>, vector<1x32xf32>
    %c56 = arith.constant 56 : index
    %c0_12 = arith.constant 0 : index
    %30 = vector.load %arg3[%c56, %c0_12] : memref<248x32xf32, #tpu.memory_space<vmem>>, vector<32x32xf32>
    %c88 = arith.constant 88 : index
    %c0_13 = arith.constant 0 : index
    %31 = vector.load %arg3[%c88, %c0_13] : memref<248x32xf32, #tpu.memory_space<vmem>>, vector<1x32xf32>
    %cst_14 = arith.constant dense<0.000000e+00> : vector<8x32xf32>
    %32 = tpu.matmul %27, %28, %cst_14 {dimension_numbers = #tpu.dot_dimension_numbers<[1], [0], [0], [1], [0, 0, 1, 1], [], []>} : vector<8x32xf32>, vector<32x32xf32>, vector<8x32xf32> -> vector<8x32xf32>
    %33 = vector.broadcast %29 : vector<1x32xf32> to vector<8x32xf32>
    %34 = arith.addf %32, %33 : vector<8x32xf32>
    %cst_15 = arith.constant 0.000000e+00 : f32
    %35 = vector.broadcast %cst_15 : f32 to vector<8x32xf32>
    %36 = arith.maximumf %34, %35 : vector<8x32xf32>
    %cst_16 = arith.constant dense<0.000000e+00> : vector<8x32xf32>
    %37 = tpu.matmul %36, %30, %cst_16 {dimension_numbers = #tpu.dot_dimension_numbers<[1], [0], [0], [1], [0, 0, 1, 1], [], []>} : vector<8x32xf32>, vector<32x32xf32>, vector<8x32xf32> -> vector<8x32xf32>
    %38 = vector.broadcast %31 : vector<1x32xf32> to vector<8x32xf32>
    %39 = arith.addf %37, %38 : vector<8x32xf32>
    %c96 = arith.constant 96 : index
    %c0_17 = arith.constant 0 : index
    %40 = vector.load %arg3[%c96, %c0_17] : memref<248x32xf32, #tpu.memory_space<vmem>>, vector<1x32xf32>
    %c104 = arith.constant 104 : index
    %c0_18 = arith.constant 0 : index
    %41 = vector.load %arg3[%c104, %c0_18] : memref<248x32xf32, #tpu.memory_space<vmem>>, vector<1x32xf32>
    %42 = arith.addf %27, %39 : vector<8x32xf32>
    %cst_19 = arith.constant dense<0.000000e+00> : vector<8xf32>
    %43 = vector.multi_reduction <add>, %42, %cst_19 [1] : vector<8x32xf32> to vector<8xf32>
    %44 = vector.shape_cast %43 : vector<8xf32> to vector<8x1xf32>
    %cst_20 = arith.constant 3.200000e+01 : f32
    %45 = vector.broadcast %cst_20 : f32 to vector<8x1xf32>
    %46 = arith.divf %44, %45 : vector<8x1xf32>
    %47 = vector.broadcast %46 : vector<8x1xf32> to vector<8x32xf32>
    %48 = arith.subf %42, %47 : vector<8x32xf32>
    %49 = arith.mulf %48, %48 : vector<8x32xf32>
    %cst_21 = arith.constant dense<0.000000e+00> : vector<8xf32>
    %50 = vector.multi_reduction <add>, %49, %cst_21 [1] : vector<8x32xf32> to vector<8xf32>
    %51 = vector.shape_cast %50 : vector<8xf32> to vector<8x1xf32>
    %cst_22 = arith.constant 3.200000e+01 : f32
    %52 = vector.broadcast %cst_22 : f32 to vector<8x1xf32>
    %53 = arith.divf %51, %52 : vector<8x1xf32>
    %54 = vector.broadcast %46 : vector<8x1xf32> to vector<8x32xf32>
    %55 = arith.subf %42, %54 : vector<8x32xf32>
    %cst_23 = arith.constant 9.99999974E-6 : f32
    %56 = vector.broadcast %cst_23 : f32 to vector<8x1xf32>
    %57 = arith.addf %53, %56 : vector<8x1xf32>
    %58 = math.rsqrt %57 : vector<8x1xf32>
    %59 = vector.broadcast %58 : vector<8x1xf32> to vector<8x32xf32>
    %60 = arith.mulf %55, %59 : vector<8x32xf32>
    %61 = vector.broadcast %40 : vector<1x32xf32> to vector<8x32xf32>
    %62 = arith.mulf %60, %61 : vector<8x32xf32>
    %63 = vector.broadcast %41 : vector<1x32xf32> to vector<8x32xf32>
    %64 = arith.addf %62, %63 : vector<8x32xf32>
    %c112 = arith.constant 112 : index
    %c0_24 = arith.constant 0 : index
    %65 = vector.load %arg3[%c112, %c0_24] : memref<248x32xf32, #tpu.memory_space<vmem>>, vector<32x32xf32>
    %c144 = arith.constant 144 : index
    %c0_25 = arith.constant 0 : index
    %66 = vector.load %arg3[%c144, %c0_25] : memref<248x32xf32, #tpu.memory_space<vmem>>, vector<1x32xf32>
    %c152 = arith.constant 152 : index
    %c0_26 = arith.constant 0 : index
    %67 = vector.load %arg3[%c152, %c0_26] : memref<248x32xf32, #tpu.memory_space<vmem>>, vector<32x32xf32>
    %c184 = arith.constant 184 : index
    %c0_27 = arith.constant 0 : index
    %68 = vector.load %arg3[%c184, %c0_27] : memref<248x32xf32, #tpu.memory_space<vmem>>, vector<1x32xf32>
    %cst_28 = arith.constant dense<0.000000e+00> : vector<8x32xf32>
    %69 = tpu.matmul %64, %65, %cst_28 {dimension_numbers = #tpu.dot_dimension_numbers<[1], [0], [0], [1], [0, 0, 1, 1], [], []>} : vector<8x32xf32>, vector<32x32xf32>, vector<8x32xf32> -> vector<8x32xf32>
    %70 = vector.broadcast %66 : vector<1x32xf32> to vector<8x32xf32>
    %71 = arith.addf %69, %70 : vector<8x32xf32>
    %cst_29 = arith.constant 0.000000e+00 : f32
    %72 = vector.broadcast %cst_29 : f32 to vector<8x32xf32>
    %73 = arith.maximumf %71, %72 : vector<8x32xf32>
    %cst_30 = arith.constant dense<0.000000e+00> : vector<8x32xf32>
    %74 = tpu.matmul %73, %67, %cst_30 {dimension_numbers = #tpu.dot_dimension_numbers<[1], [0], [0], [1], [0, 0, 1, 1], [], []>} : vector<8x32xf32>, vector<32x32xf32>, vector<8x32xf32> -> vector<8x32xf32>
    %75 = vector.broadcast %68 : vector<1x32xf32> to vector<8x32xf32>
    %76 = arith.addf %74, %75 : vector<8x32xf32>
    %c192 = arith.constant 192 : index
    %c0_31 = arith.constant 0 : index
    %77 = vector.load %arg3[%c192, %c0_31] : memref<248x32xf32, #tpu.memory_space<vmem>>, vector<1x32xf32>
    %c200 = arith.constant 200 : index
    %c0_32 = arith.constant 0 : index
    %78 = vector.load %arg3[%c200, %c0_32] : memref<248x32xf32, #tpu.memory_space<vmem>>, vector<1x32xf32>
    %79 = arith.addf %64, %76 : vector<8x32xf32>
    %cst_33 = arith.constant dense<0.000000e+00> : vector<8xf32>
    %80 = vector.multi_reduction <add>, %79, %cst_33 [1] : vector<8x32xf32> to vector<8xf32>
    %81 = vector.shape_cast %80 : vector<8xf32> to vector<8x1xf32>
    %cst_34 = arith.constant 3.200000e+01 : f32
    %82 = vector.broadcast %cst_34 : f32 to vector<8x1xf32>
    %83 = arith.divf %81, %82 : vector<8x1xf32>
    %84 = vector.broadcast %83 : vector<8x1xf32> to vector<8x32xf32>
    %85 = arith.subf %79, %84 : vector<8x32xf32>
    %86 = arith.mulf %85, %85 : vector<8x32xf32>
    %cst_35 = arith.constant dense<0.000000e+00> : vector<8xf32>
    %87 = vector.multi_reduction <add>, %86, %cst_35 [1] : vector<8x32xf32> to vector<8xf32>
    %88 = vector.shape_cast %87 : vector<8xf32> to vector<8x1xf32>
    %cst_36 = arith.constant 3.200000e+01 : f32
    %89 = vector.broadcast %cst_36 : f32 to vector<8x1xf32>
    %90 = arith.divf %88, %89 : vector<8x1xf32>
    %91 = vector.broadcast %83 : vector<8x1xf32> to vector<8x32xf32>
    %92 = arith.subf %79, %91 : vector<8x32xf32>
    %cst_37 = arith.constant 9.99999974E-6 : f32
    %93 = vector.broadcast %cst_37 : f32 to vector<8x1xf32>
    %94 = arith.addf %90, %93 : vector<8x1xf32>
    %95 = math.rsqrt %94 : vector<8x1xf32>
    %96 = vector.broadcast %95 : vector<8x1xf32> to vector<8x32xf32>
    %97 = arith.mulf %92, %96 : vector<8x32xf32>
    %98 = vector.broadcast %77 : vector<1x32xf32> to vector<8x32xf32>
    %99 = arith.mulf %97, %98 : vector<8x32xf32>
    %100 = vector.broadcast %78 : vector<1x32xf32> to vector<8x32xf32>
    %101 = arith.addf %99, %100 : vector<8x32xf32>
    %c208 = arith.constant 208 : index
    %c0_38 = arith.constant 0 : index
    %102 = vector.load %arg3[%c208, %c0_38] : memref<248x32xf32, #tpu.memory_space<vmem>>, vector<32x32xf32>
    %c240 = arith.constant 240 : index
    %c0_39 = arith.constant 0 : index
    %103 = vector.load %arg3[%c240, %c0_39] : memref<248x32xf32, #tpu.memory_space<vmem>>, vector<1x32xf32>
    %cst_40 = arith.constant dense<0.000000e+00> : vector<8x32xf32>
    %104 = tpu.matmul %101, %102, %cst_40 {dimension_numbers = #tpu.dot_dimension_numbers<[1], [0], [0], [1], [0, 0, 1, 1], [], []>} : vector<8x32xf32>, vector<32x32xf32>, vector<8x32xf32> -> vector<8x32xf32>
    %105 = vector.broadcast %103 : vector<1x32xf32> to vector<8x32xf32>
    %106 = arith.addf %104, %105 : vector<8x32xf32>
    %107 = vector.extract_strided_slice %106 {offsets = [0, 16], sizes = [8, 16], strides = [1, 1]} : vector<8x32xf32> to vector<8x16xf32>
    %cst_41 = arith.constant 5.000000e-01 : f32
    %108 = vector.broadcast %cst_41 : f32 to vector<8x16xf32>
    %109 = arith.mulf %108, %107 : vector<8x16xf32>
    %110 = math.exp %109 : vector<8x16xf32>
    %c0_42 = arith.constant 0 : index
    %c0_43 = arith.constant 0 : index
    %111 = vector.load %arg2[%c0_42, %c0_43] : memref<8x16xf32, #tpu.memory_space<vmem>>, vector<8x16xf32>
    %112 = arith.mulf %111, %110 : vector<8x16xf32>
    %113 = vector.extract_strided_slice %106 {offsets = [0, 0], sizes = [8, 16], strides = [1, 1]} : vector<8x32xf32> to vector<8x16xf32>
    %114 = arith.addf %112, %113 : vector<8x16xf32>
    %115 = tpu.concatenate %106, %114 in 1 : vector<8x32xf32>, vector<8x16xf32> -> vector<8x48xf32>
    %c0_44 = arith.constant 0 : index
    %c0_45 = arith.constant 0 : index
    %116 = vector.load %arg4[%c0_44, %c0_45] : memref<8x48xf32, #tpu.memory_space<vmem>>, vector<8x48xf32>
    tpu.vector_store %arg4[%c0_44, %c0_45], %115 {strides = array<i32>} : memref<8x48xf32, #tpu.memory_space<vmem>>, vector<8x48xf32>,
    return
  }
}

</mosaic_0001>

<bundles_post_ra>
// kernel: tpu_custom_call.1
= control target key start
LH: loop header
LB: loop body
LE: loop exit
PB: predicated region body
PF: predicated region fallthrough
CT: control target
= control target key end

     0   :  { %s414_s19 = smov 112   ;;  %s587_s0 = inlined_call_operand.vmem [shape: f32[8,48], index: 0, kind: input, shape index: {}]   ;;  %s588_s1 = inlined_call_operand.vmem [shape: f32[8,48], index: 1, kind: input, shape index: {}]   ;;  %s589_s2 = inlined_call_operand.vmem [shape: f32[8,16], index: 2, kind: input, shape index: {}]   ;;  %s590_s3 = inlined_call_operand.vmem [shape: f32[248,32], index: 3, kind: input, shape index: {}]   ;;  %s591_s4 = inlined_call_operand.hbm [shape: f32[8,48], index: 4, kind: output, shape index: {}]  }
   0x1   :  { %v18_v0 = vld [vmem:[%s588_s1] sm:$0xff] }
   0x2   :  { %v19_v1 = vld [vmem:[%s587_s0] sm:$0xff] }
   0x3   :  { %v20_v2 = vsub.f32 %v18_v0, %v19_v1 }
   0x5   :  { %24 = vrot.lane.b32.xlu0 %v20_v2, %s414_s19 }
   0x6   :  { %9 = vsyncpa [#allocation3], 0  ;;  %vm27_vm0 = vcmask 261120   ;;  %v415_v5 = vmov 32.0   ;;  %v367_v16 = vld [vmem:[%s590_s3] ss:$0 sm:$0xff] }
   0x7   :  { %378 = vrcp.f32 %v415_v5  ;;  %s416_s20 = smov 16   ;;  %v368_v17 = vld [vmem:[%s590_s3 + $0x8] ss:$0 sm:$0xff]  ;;  %v75_v21 = vld [vmem:[%s590_s3 + $0x20] sm:$0xff]  ;;  %v74_v22 = vld [vmem:[%s590_s3 + $0x18] sm:$0xff]  ;;  %s417_s30 = smov 32  }
   0x8   :  { %63 = vrot.lane.b32.xlu2 %v367_v16, %s416_s20  ;;  %v76_v20 = vld [vmem:[%s590_s3 + $0x28] sm:$0xff]  ;;  %v73_v25 = vld [vmem:[%s590_s3 + $0x10] sm:$0xff]  ;;  %v79_v42 = vld [vmem:[%s590_s3 + $0x40] sm:$0xff]  ;;  %s418_s5 = smov [#allocation2]   ;;  %s348_s8 = sshll.u32 %s591_s4, 4  ;;  %vm339_vm11 = vcmask 392192   ;;  %s349_s8 = int_to_ptr.hbm [resolvable:$true] %s348_s8 }
   0x9   :  { %101 = vmatpush.msra.mxu0 %v76_v20  ;;  %v81_v39 = vld [vmem:[%s590_s3 + $0x50] sm:$0xff]  ;;  %v80_v41 = vld [vmem:[%s590_s3 + $0x48] sm:$0xff]  ;;  %v78_v43 = vld [vmem:[%s590_s3 + $0x38] sm:$0xff]  ;;  %s346_s6 = sshll.u32 %s418_s5, 4  ;;  %s347_s6 = int_to_ptr.vmem [resolvable:$true] %s346_s6 }
   0xa   :  { %126 = vmatpush.msra.mxu1 %v81_v39  ;;  %v369_v44 = vld [vmem:[%s590_s3 + $0x30] ss:$0 sm:$0xff]  ;;  %v370_v48 = vld [vmem:[%s590_s3 + $0x58] ss:$0 sm:$0xff]  ;;  %v372_v59 = vld [vmem:[%s590_s3 + $0x68] ss:$0 sm:$0xff] }
   0xb   :  { %102 = vmatpush.msra.mxu0 %v75_v21  ;;  %v371_v62 = vld [vmem:[%s590_s3 + $0x60] ss:$0 sm:$0xff]  ;;  %v186_v63 = vld [vmem:[%s590_s3 + $0x88] sm:$0xff]  ;;  %v184_v1 = vld [vmem:[%s590_s3 + $0x78] sm:$0xff] }
   0xc   :  { %127 = vmatpush.msra.mxu1 %v80_v41  ;;  %v185_v0 = vld [vmem:[%s590_s3 + $0x80] sm:$0xff]  ;;  %211 = vmatpush.msra.mxu2 %v186_v63  ;;  %v190_v21 = vld [vmem:[%s590_s3 + $0xa8] sm:$0xff] }
   0xd   :  { %v379_v6 = vpop.eup %378  ;;  %103 = vmatpush.msra.mxu0 %v74_v22  ;;  %v189_v22 = vld [vmem:[%s590_s3 + $0xa0] sm:$0xff] }
   0xe   :  { %v32_v7 = vmul.f32 32.0, %v379_v6  ;;  %vm36_vm1 = vweird.f32 %v379_v6  ;;  %128 = vmatpush.msra.mxu1 %v79_v42  ;;  %212 = vmatpush.msra.mxu2 %v185_v0  ;;  %v375_v39 = vld [vmem:[%s590_s3 + $0xc0] ss:$0 sm:$0xff] }
   0xf   :  { %104 = vmatpush.msra.mxu0 %v73_v25 }
  0x10   :  { %v33_v8 = vsub.f32 1.0, %v32_v7  ;;  %69 = vrot.lane.b32.xlu2 %v368_v17, %s416_s20  ;;  %129 = vmatpush.msra.mxu1 %v78_v43  ;;  %v296_v43 = vld [vmem:[%s590_s3 + $0xe8] sm:$0xff] }
  0x11   :  { %213 = vmatpush.msra.mxu2 %v184_v1  ;;  %316 = vmatpush.msrb.mxu0 %v296_v43 }
  0x12   :  { %v34_v9 = vmul.f32 %v379_v6, %v33_v8 }
  0x14   :  { %v35_v10 = vadd.f32 %v379_v6, %v34_v9 }
  0x16   :  { %v452_v11 = vsel %vm36_vm1, %v379_v6, %v35_v10 }
  0x62   :  { %v64_v30 = vpop.permute.xlu2 %63 }
  0x6a   :  { %v70_v36 = vpop.permute.xlu2 %69 }
  0x77   :  { %v25_v3 = vpop.permute.xlu0 %24 }
  0x78   :  { %v28_v4 = vsel %vm27_vm0, %v25_v3, 0.0 }
  0x79   :  { %29 = vadd.xlane.f32.xlu0 %v28_v4  ;;  %v183_v4 = vld [vmem:[%s590_s3 + $0x70] sm:$0xff] }
  0x7a   :  { %214 = vmatpush.msra.mxu2 %v183_v4  ;;  %v327_v4 = vld [vmem:[%s589_s2] sm:$0xff] }
  0xec   :  { %v30_v12 = vpop.xlane.xlu0 %29 }
  0xed   :  { %v38_v13 = vmul.f32 %v452_v11, %v30_v12 }
  0xef   :  { %v39_v14 = vsub.f32 %v20_v2, %v38_v13 }
  0xf1   :  { %v40_v15 = vmul.f32 %v39_v14, %v39_v14 }
  0xf3   :  { %42 = vrot.lane.b32.xlu1 %v40_v15, %s414_s19 }
 0x165   :  { %v43_v18 = vpop.permute.xlu1 %42 }
 0x166   :  { %v45_v19 = vsel %vm27_vm0, %v43_v18, 0.0 }
 0x167   :  { %46 = vadd.xlane.f32.xlu1 %v45_v19  ;;  %v191_v19 = vld [vmem:[%s590_s3 + $0xb0] sm:$0xff] }
 0x168   :  { %236 = vmatpush.msra.mxu3 %v191_v19 }
 0x16a   :  { %237 = vmatpush.msra.mxu3 %v190_v21 }
 0x16c   :  { %238 = vmatpush.msra.mxu3 %v189_v22 }
 0x1da   :  { %v47_v23 = vpop.xlane.xlu1 %46 }
 0x1db   :  { %v48_v24 = vmul.f32 %v47_v23, %v452_v11  ;;  %v188_v23 = vld [vmem:[%s590_s3 + $0x98] sm:$0xff] }
 0x1dc   :  { %239 = vmatpush.msra.mxu3 %v188_v23 }
 0x1dd   :  { %v49_v26 = vadd.f32 1e-05, %v48_v24  ;;  %v373_v24 = vld [vmem:[%s590_s3 + $0x90] ss:$0 sm:$0xff] }
 0x1df   :  { %380 = vrsqrt.f32 %v49_v26  ;;  %vm56_vm3 = vweird.f32 %v49_v26 }
 0x1e5   :  { %v381_v27 = vpop.eup %380 }
 0x1e6   :  { %v51_v28 = vmul.f32 %v381_v27, %v49_v26  ;;  %vm57_vm2 = vweird.f32 %v381_v27 }
 0x1e7   :  { %vm58_vm4 = vmor %vm56_vm3, %vm57_vm2 }
 0x1e8   :  { %v52_v29 = vmul.f32 %v381_v27, %v51_v28  ;;  %v374_v28 = vld [vmem:[%s590_s3 + $0xb8] ss:$0 sm:$0xff] }
 0x1ea   :  { %v53_v31 = vmul.f32 0.5, %v52_v29 }
 0x1ec   :  { %v54_v32 = vsub.f32 1.5, %v53_v31 }
 0x1ee   :  { %v55_v33 = vmul.f32 %v381_v27, %v54_v32 }
 0x1f0   :  { %v59_v34 = vsel %vm58_vm4, %v381_v27, %v55_v33 }
 0x1f1   :  { %v60_v35 = vmul.f32 %v59_v34, %v39_v14 }
 0x1f3   :  { %v66_v37 = vmul.f32 %v64_v30, %v60_v35 }
 0x1f5   :  { %v72_v38 = vadd.f32 %v70_v36, %v66_v37 }
 0x1f7   :  { %85 = vrot.lane.b32.xlu2 %v72_v38, %s414_s19 }
 0x251   :  { %v86_v40 = vpop.permute.xlu2 %85 }
 0x252   :  { %357 = vmatmul.msk.f32.vlgmr.msra.gmra.mxu0 %vm27_vm0, %v86_v40  ;;  %v376_v40 = vld [vmem:[%s590_s3 + $0xc8] ss:$0 sm:$0xff] }
 0x2cf   :  { %v106_v45 = vpop.f32.mrf.mxu0 }
 0x2d0   :  { %v107_v46 = vadd.f32 %v369_v44, %v106_v45  ;;  %v295_v44 = vld [vmem:[%s590_s3 + $0xe0] sm:$0xff]  ;;  %v294_v45 = vld [vmem:[%s590_s3 + $0xd8] sm:$0xff] }
 0x2d1   :  { %317 = vmatpush.msrb.mxu0 %v295_v44 }
 0x2d2   :  { %v109_v47 = vmax.f32 %v107_v46, 0.0 }
 0x2d3   :  { %318 = vmatpush.msrb.mxu0 %v294_v45 }
 0x2d4   :  { %358 = vmatmul.msk.f32.vlgmr.msra.gmra.mxu1 %vm27_vm0, %v109_v47 }
 0x351   :  { %v131_v49 = vpop.f32.mrf.mxu1 }
 0x352   :  { %v132_v50 = vadd.f32 %v370_v48, %v131_v49  ;;  %v293_v48 = vld [vmem:[%s590_s3 + $0xd0] sm:$0xff] }
 0x353   :  { %319 = vmatpush.msrb.mxu0 %v293_v48 }
 0x354   :  { %137 = vrot.lane.b32.xlu2 %v132_v50, %s416_s20 }
 0x3ae   :  { %v138_v51 = vpop.permute.xlu2 %137 }
 0x3af   :  { %v140_v52 = vadd.f32 %v138_v51, %v72_v38 }
 0x3b1   :  { %142 = vrot.lane.b32.xlu2 %v140_v52, %s414_s19 }
 0x40b   :  { %v143_v53 = vpop.permute.xlu2 %142 }
 0x40c   :  { %v145_v54 = vsel %vm27_vm0, %v143_v53, 0.0 }
 0x40d   :  { %146 = vadd.xlane.f32.xlu2 %v145_v54 }
 0x480   :  { %v147_v55 = vpop.xlane.xlu2 %146 }
 0x481   :  { %v148_v56 = vmul.f32 %v147_v55, %v452_v11 }
 0x483   :  { %v149_v57 = vsub.f32 %v140_v52, %v148_v56 }
 0x485   :  { %v150_v58 = vmul.f32 %v149_v57, %v149_v57 }
 0x487   :  { %152 = vrot.lane.b32.xlu0 %v150_v58, %s414_s19 }
 0x48f   :  { %179 = vrot.lane.b32.xlu0 %v372_v59, %s416_s20 }
 0x4f9   :  { %v153_v60 = vpop.permute.xlu0 %152 }
 0x4fa   :  { %v155_v61 = vsel %vm27_vm0, %v153_v60, 0.0 }
 0x4fb   :  { %156 = vadd.xlane.f32.xlu1 %v155_v61 }
 0x501   :  { %v180_v16 = vpop.permute.xlu0 %179 }
 0x514   :  { %173 = vrot.lane.b32.xlu1 %v371_v62, %s416_s20  ;;  %v377_v62 = vld [vmem:[%s590_s3 + $0xf0] ss:$0 sm:$0xff] }
 0x56e   :  { %v157_v2 = vpop.xlane.xlu1 %156 }
 0x56f   :  { %v158_v3 = vmul.f32 %v157_v2, %v452_v11 }
 0x571   :  { %v159_v5 = vadd.f32 1e-05, %v158_v3 }
 0x573   :  { %382 = vrsqrt.f32 %v159_v5  ;;  %vm166_vm6 = vweird.f32 %v159_v5 }
 0x579   :  { %v383_v6 = vpop.eup %382 }
 0x57a   :  { %v161_v7 = vmul.f32 %v383_v6, %v159_v5  ;;  %vm167_vm5 = vweird.f32 %v383_v6 }
 0x57b   :  { %vm168_vm7 = vmor %vm166_vm6, %vm167_vm5 }
 0x57c   :  { %v162_v8 = vmul.f32 %v383_v6, %v161_v7 }
 0x57e   :  { %v163_v9 = vmul.f32 0.5, %v162_v8 }
 0x580   :  { %v164_v10 = vsub.f32 1.5, %v163_v9 }
 0x582   :  { %v165_v12 = vmul.f32 %v383_v6, %v164_v10 }
 0x584   :  { %v169_v13 = vsel %vm168_vm7, %v383_v6, %v165_v12 }
 0x585   :  { %v170_v14 = vmul.f32 %v169_v13, %v149_v57 }
 0x586   :  { %v174_v15 = vpop.permute.xlu1 %173 }
 0x587   :  { %v176_v17 = vmul.f32 %v174_v15, %v170_v14 }
 0x589   :  { %v182_v18 = vadd.f32 %v180_v16, %v176_v17 }
 0x58b   :  { %195 = vrot.lane.b32.xlu0 %v182_v18, %s414_s19 }
 0x5fd   :  { %v196_v20 = vpop.permute.xlu0 %195 }
 0x5fe   :  { %359 = vmatmul.msk.f32.vlgmr.msra.gmra.mxu2 %vm27_vm0, %v196_v20 }
 0x681   :  { %v216_v25 = vpop.f32.mrf.mxu2 }
 0x682   :  { %v217_v26 = vadd.f32 %v373_v24, %v216_v25 }
 0x684   :  { %v219_v27 = vmax.f32 %v217_v26, 0.0 }
 0x686   :  { %360 = vmatmul.msk.f32.vlgmr.msra.gmra.mxu3 %vm27_vm0, %v219_v27 }
 0x709   :  { %v241_v29 = vpop.f32.mrf.mxu3 }
 0x70a   :  { %v242_v30 = vadd.f32 %v374_v28, %v241_v29 }
 0x70c   :  { %247 = vrot.lane.b32.xlu2 %v242_v30, %s416_s20 }
 0x714   :  { %283 = vrot.lane.b32.xlu2 %v375_v39, %s416_s20 }
 0x71c   :  { %289 = vrot.lane.b32.xlu2 %v376_v40, %s416_s20 }
 0x766   :  { %v248_v31 = vpop.permute.xlu2 %247 }
 0x767   :  { %v250_v32 = vadd.f32 %v248_v31, %v182_v18 }
 0x769   :  { %252 = vrot.lane.b32.xlu1 %v250_v32, %s414_s19 }
 0x76e   :  { %v284_v53 = vpop.permute.xlu2 %283 }
 0x776   :  { %v290_v58 = vpop.permute.xlu2 %289 }
 0x7db   :  { %v253_v33 = vpop.permute.xlu1 %252 }
 0x7dc   :  { %v255_v34 = vsel %vm27_vm0, %v253_v33, 0.0 }
 0x7dd   :  { %256 = vadd.xlane.f32.xlu0 %v255_v34 }
 0x850   :  { %v257_v35 = vpop.xlane.xlu0 %256 }
 0x851   :  { %v258_v36 = vmul.f32 %v257_v35, %v452_v11 }
 0x853   :  { %v259_v37 = vsub.f32 %v250_v32, %v258_v36 }
 0x855   :  { %v260_v38 = vmul.f32 %v259_v37, %v259_v37 }
 0x857   :  { %262 = vrot.lane.b32.xlu1 %v260_v38, %s414_s19 }
 0x8c9   :  { %v263_v41 = vpop.permute.xlu1 %262 }
 0x8ca   :  { %v265_v42 = vsel %vm27_vm0, %v263_v41, 0.0 }
 0x8cb   :  { %266 = vadd.xlane.f32.xlu1 %v265_v42 }
 0x93e   :  { %v267_v46 = vpop.xlane.xlu1 %266 }
 0x93f   :  { %v268_v47 = vmul.f32 %v267_v46, %v452_v11 }
 0x941   :  { %v269_v49 = vadd.f32 1e-05, %v268_v47 }
 0x943   :  { %384 = vrsqrt.f32 %v269_v49  ;;  %vm276_vm9 = vweird.f32 %v269_v49 }
 0x949   :  { %v385_v50 = vpop.eup %384 }
 0x94a   :  { %v271_v51 = vmul.f32 %v385_v50, %v269_v49  ;;  %vm277_vm8 = vweird.f32 %v385_v50 }
 0x94b   :  { %vm278_vm10 = vmor %vm276_vm9, %vm277_vm8 }
 0x94c   :  { %v272_v52 = vmul.f32 %v385_v50, %v271_v51 }
 0x94e   :  { %v273_v54 = vmul.f32 0.5, %v272_v52 }
 0x950   :  { %v274_v55 = vsub.f32 1.5, %v273_v54 }
 0x952   :  { %v275_v56 = vmul.f32 %v385_v50, %v274_v55 }
 0x954   :  { %v279_v57 = vsel %vm278_vm10, %v385_v50, %v275_v56 }
 0x955   :  { %v280_v11 = vmul.f32 %v279_v57, %v259_v37 }
 0x957   :  { %v286_v59 = vmul.f32 %v284_v53, %v280_v11 }
 0x959   :  { %v292_v60 = vadd.f32 %v290_v58, %v286_v59 }
 0x95b   :  { %300 = vrot.lane.b32.xlu2 %v292_v60, %s414_s19 }
 0x9b5   :  { %v301_v61 = vpop.permute.xlu2 %300 }
 0x9b6   :  { %361 = vmatmul.msk.f32.vlgmr.msrb.gmra.mxu0 %vm27_vm0, %v301_v61 }
 0xa33   :  { %v321_v63 = vpop.f32.mrf.mxu0 }
 0xa34   :  { %v322_v0 = vadd.f32 %v377_v62, %v321_v63 }
 0xa36   :  { %v324_v1 = vmul.f32 0.5, %v322_v0 }
 0xa38   :  { %v325_v2 = vmul.f32 1.442695, %v324_v1 }
 0xa3a   :  { %386 = vpow2.f32 %v325_v2 }
 0xa40   :  { %v387_v3 = vpop.eup %386 }
 0xa41   :  { %329 = vrot.lane.b32.xlu0 %v387_v3, %s414_s19 }
 0xab3   :  { %v330_v5 = vpop.permute.xlu0 %329 }
 0xab4   :  { %v332_v6 = vmul.f32 %v330_v5, %v327_v4 }
 0xab6   :  { %v333_v7 = vadd.f32 %v332_v6, %v322_v0 }
 0xab8   :  { %335 = vrot.lane.b32.xlu2 %v333_v7, %s417_s30 }
 0xb12   :  { %v336_v8 = vpop.permute.xlu2 %335 }
 0xb13   :  { %v338_v9 = vsel %vm27_vm0, %v322_v0, %v336_v8 }
 0xb14   :  { %340 = vst.msk [vmem:[#allocation2] sm:$0xff] %vm339_vm11, %v338_v9 }
 0xb15   :  { %351 = dma.vmem_to_hbm [thread:$0]  %s347_s6, 128, %s349_s8, [#allocation3]  }
 0xb16   :  { %412 = dma.done.wait [#allocation3], 128  }
 0xb17   :  { %413 = vsyncadd [#allocation3], 4294967168 }
 0xb18   :  { %356 = vsyncpa [#allocation3], 1 }

</bundles_post_ra>
